<compile_context>
chip_gen: v7x
topology: tpu7x:2x2x1
jax: 0.10.0
libtpu: 0.0.40
codegen_flags: <defaults>
</compile_context>

<pallas_src>
import functools

import jax
import jax.numpy as jnp
from jax.experimental import pallas as pl
from jax.experimental.pallas import tpu as pltpu


def _round_up(x, m):
    return ((x + m - 1) // m) * m


def _pick_tile(hw, c, in_itemsize, max_tile):
    """Choose a lane tile that is big but keeps all buffers inside scoped VMEM."""
    # Per lane-column VMEM bytes: 3 f32 accumulators (C rows) +
    # double-buffered pred block (C rows, native dtype) + double-buffered mask row.
    bytes_per_lane = c * (3 * 4 + 2 * in_itemsize) + 2 * 4
    budget = 12 * 1024 * 1024  # fits default scoped-VMEM limit on v5e/v6e/v7x
    cap = max(128, (budget // bytes_per_lane) // 128 * 128)
    max_tile = max(128, min(int(max_tile), cap))
    n_tiles = -(-hw // max_tile)                      # cdiv
    tile_n = _round_up(-(-hw // n_tiles), 128)        # minimizes padding
    return tile_n, n_tiles


def _dice_kernel(pred_ref, mask_ref, out_ref, tp_acc, oh_acc, sm_acc, *, hw, tile_n):
    j = pl.program_id(1)

    @pl.when(j == 0)
    def _():
        tp_acc[...] = jnp.zeros_like(tp_acc)
        oh_acc[...] = jnp.zeros_like(oh_acc)
        sm_acc[...] = jnp.zeros_like(sm_acc)

    p = pred_ref[...].astype(jnp.float32)        # (C, tile_n), upcast on load
    m = mask_ref[...].astype(jnp.int32)          # (1, tile_n)

    # softmax over the class axis (axis 0). Exact divide is kept (instead of
    # approx reciprocal) to stay within tight numerical tolerance of the ref;
    # the op is memory-bound so the divide is hidden anyway.
    pmax = jnp.max(p, axis=0, keepdims=True)
    e = jnp.exp(p - pmax)
    sm = e / jnp.sum(e, axis=0, keepdims=True)   # (C, tile_n)

    c = p.shape[0]
    cls = jax.lax.broadcasted_iota(jnp.int32, (c, 1), 0)            # (C, 1)
    # one-hot restricted to foreground classes; padded lanes have mask==0 so
    # they automatically contribute 0 here.
    onehot_fg = jnp.logical_and(cls == m, cls >= 1).astype(jnp.float32)  # (C, tile)
    fg = (cls >= 1).astype(jnp.float32)                             # (C, 1)

    # lane validity only matters for the softmax-only term (padded logits
    # would otherwise add uniform softmax mass).
    lane = jax.lax.broadcasted_iota(jnp.int32, (1, tile_n), 1) + j * tile_n
    valid = (lane < hw).astype(jnp.float32)                         # (1, tile)

    tp_acc[...] += sm * onehot_fg
    oh_acc[...] += onehot_fg
    sm_acc[...] += sm * (fg * valid)

    @pl.when(j == pl.num_programs(1) - 1)
    def _():
        tp = jnp.sum(tp_acc[...])
        oh = jnp.sum(oh_acc[...])
        sms = jnp.sum(sm_acc[...])
        out_ref[...] = jnp.concatenate(
            [
                jnp.full((1, 128), tp, dtype=jnp.float32),
                jnp.full((1, 128), oh, dtype=jnp.float32),
                jnp.full((1, 128), sms, dtype=jnp.float32),
            ],
            axis=0,
        )


def dice_loss(pred, masks, epsilon=1e-5, max_tile=32768):
    """pred: [B, C, H, W] float logits (NCHW); masks: [B, H, W] int labels in [0, C)."""
    B, C, H, W = pred.shape
    hw = H * W

    tile_n, n_tiles = _pick_tile(hw, C, jnp.dtype(pred.dtype).itemsize, max_tile)
    hw_pad = tile_n * n_tiles

    # Free reshapes — no transpose, no dtype change on the host side.
    pred3 = pred.reshape(B, C, hw)
    mask3 = masks.reshape(B, 1, hw)
    if not jnp.issubdtype(mask3.dtype, jnp.integer):
        mask3 = mask3.astype(jnp.int32)
    if hw_pad != hw:
        pred3 = jnp.pad(pred3, ((0, 0), (0, 0), (0, hw_pad - hw)))
        mask3 = jnp.pad(mask3, ((0, 0), (0, 0), (0, hw_pad - hw)))  # pad label = 0 (bg)

    kernel = functools.partial(_dice_kernel, hw=hw, tile_n=tile_n)

    partials = pl.pallas_call(
        kernel,
        out_shape=jax.ShapeDtypeStruct((B, 3, 128), jnp.float32),
        grid_spec=pltpu.PrefetchScalarGridSpec(
            num_scalar_prefetch=0,
            grid=(B, n_tiles),
            in_specs=[
                pl.BlockSpec((None, C, tile_n), lambda b, j: (b, 0, j)),
                pl.BlockSpec((None, 1, tile_n), lambda b, j: (b, 0, j)),
            ],
            out_specs=pl.BlockSpec((None, 3, 128), lambda b, j: (b, 0, 0)),
            scratch_shapes=[pltpu.VMEM((C, tile_n), jnp.float32)] * 3,
        ),
        compiler_params=pltpu.CompilerParams(
            dimension_semantics=("parallel", "arbitrary"),
        ),
    )(pred3, mask3)

    tp = jnp.sum(partials[:, 0, 0])
    oh = jnp.sum(partials[:, 1, 0])
    sms = jnp.sum(partials[:, 2, 0])
    fp = oh - tp
    fn = sms - tp
    eps = jnp.float32(epsilon)
    return 1.0 - (2.0 * tp + eps) / (2.0 * tp + fp + fn + eps)


def _dice_loss_ref(pred, masks, epsilon=1e-5):
    """Plain-JAX reference mirroring the PyTorch forward (testing=False)."""
    C = pred.shape[1]
    onehot = jax.nn.one_hot(masks, C, dtype=jnp.float32)   # [B,H,W,C]
    onehot = jnp.moveaxis(onehot, 3, 1)                     # [B,C,H,W]
    sm = jax.nn.softmax(pred.astype(jnp.float32), axis=1)
    tp = jnp.sum(sm[:, 1:] * onehot[:, 1:])
    fp = jnp.sum(onehot[:, 1:]) - tp
    fn = jnp.sum(sm[:, 1:]) - tp
    return 1.0 - (2.0 * tp + epsilon) / (2.0 * tp + fp + fn + epsilon)


if __name__ == "__main__":
    key = jax.random.PRNGKey(0)
    k1, k2, k3, k4 = jax.random.split(key, 4)

    # Main case (matches the module's expected shapes).
    B, C, H, W = 2, 4, 16, 16
    pred = jax.random.normal(k1, (B, C, H, W), dtype=jnp.float32)
    masks = jax.random.randint(k2, (B, H, W), 0, C, dtype=jnp.int32)

    loss = jax.block_until_ready(dice_loss(pred, masks))
    ref = jax.block_until_ready(_dice_loss_ref(pred, masks))
    assert jnp.allclose(loss, ref, atol=1e-5, rtol=1e-5), (loss, ref)

    # Multi-tile accumulation path (force more than one lane tile).
    loss_mt = jax.block_until_ready(dice_loss(pred, masks, max_tile=128))
    assert jnp.allclose(loss_mt, ref, atol=1e-5, rtol=1e-5), (loss_mt, ref)

    # Native bf16 logits streamed without a host-side upcast.
    pred_bf16 = pred.astype(jnp.bfloat16)
    loss_bf = jax.block_until_ready(dice_loss(pred_bf16, masks))
    ref_bf = jax.block_until_ready(_dice_loss_ref(pred_bf16, masks))
    assert jnp.allclose(loss_bf, ref_bf, atol=1e-5, rtol=1e-5), (loss_bf, ref_bf)

    # Ragged spatial size (exercises lane padding + validity masking).
    B2, C2, H2, W2 = 1, 3, 5, 7
    pred2 = jax.random.normal(k3, (B2, C2, H2, W2), dtype=jnp.float32)
    masks2 = jax.random.randint(k4, (B2, H2, W2), 0, C2, dtype=jnp.int32)
    loss2 = jax.block_until_ready(dice_loss(pred2, masks2))
    ref2 = jax.block_until_ready(_dice_loss_ref(pred2, masks2))
    assert jnp.allclose(loss2, ref2, atol=1e-5, rtol=1e-5), (loss2, ref2)

    print("KERNEL_OK")
</pallas_src>

<mosaic_0001>
module attributes {stable_mosaic.version = 11 : i64} {
  func.func @_dice_kernel(%arg0: i32, %arg1: i32, %arg2: memref<1x4x256xf32, #tpu.memory_space<vmem>>, %arg3: memref<1x1x256xi32, #tpu.memory_space<vmem>>, %arg4: memref<1x3x128xf32, #tpu.memory_space<vmem>>, %arg5: memref<4x256xf32, #tpu.memory_space<vmem>>, %arg6: memref<4x256xf32, #tpu.memory_space<vmem>>, %arg7: memref<4x256xf32, #tpu.memory_space<vmem>>) attributes {dimension_semantics = [#tpu.dimension_semantics<parallel>, #tpu.dimension_semantics<arbitrary>], iteration_bounds = array<i64: 2, 1>, scalar_prefetch = 0 : i64, scratch_operands = 3 : i64, tpu.core_type = #tpu.core_type<tc>, window_params = [{transform_indices = @transform_0, window_bounds = array<i64: 1, 4, 256>}, {transform_indices = @transform_1, window_bounds = array<i64: 1, 1, 256>}, {transform_indices = @transform_2, window_bounds = array<i64: 1, 3, 128>}]} {
    %c0_i32 = arith.constant 0 : i32
    %0 = arith.cmpi eq, %arg1, %c0_i32 : i32
    %1 = arith.extui %0 : i1 to i32
    %c0_i32_0 = arith.constant 0 : i32
    %2 = arith.cmpi ne, %1, %c0_i32_0 : i32
    scf.if %2 {
      %cst_23 = arith.constant 0.000000e+00 : f32
      %55 = vector.broadcast %cst_23 : f32 to vector<4x256xf32>
      %c0_24 = arith.constant 0 : index
      %c0_25 = arith.constant 0 : index
      %56 = vector.load %arg5[%c0_24, %c0_25] : memref<4x256xf32, #tpu.memory_space<vmem>>, vector<4x256xf32>
      tpu.vector_store %arg5[%c0_24, %c0_25], %55 {strides = array<i32>} : memref<4x256xf32, #tpu.memory_space<vmem>>, vector<4x256xf32>,
      %cst_26 = arith.constant 0.000000e+00 : f32
      %57 = vector.broadcast %cst_26 : f32 to vector<4x256xf32>
      %c0_27 = arith.constant 0 : index
      %c0_28 = arith.constant 0 : index
      %58 = vector.load %arg6[%c0_27, %c0_28] : memref<4x256xf32, #tpu.memory_space<vmem>>, vector<4x256xf32>
      tpu.vector_store %arg6[%c0_27, %c0_28], %57 {strides = array<i32>} : memref<4x256xf32, #tpu.memory_space<vmem>>, vector<4x256xf32>,
      %cst_29 = arith.constant 0.000000e+00 : f32
      %59 = vector.broadcast %cst_29 : f32 to vector<4x256xf32>
      %c0_30 = arith.constant 0 : index
      %c0_31 = arith.constant 0 : index
      %60 = vector.load %arg7[%c0_30, %c0_31] : memref<4x256xf32, #tpu.memory_space<vmem>>, vector<4x256xf32>
      tpu.vector_store %arg7[%c0_30, %c0_31], %59 {strides = array<i32>} : memref<4x256xf32, #tpu.memory_space<vmem>>, vector<4x256xf32>,
    } else {
    }
    %c0 = arith.constant 0 : index
    %c0_1 = arith.constant 0 : index
    %c0_2 = arith.constant 0 : index
    %3 = vector.load %arg2[%c0, %c0_1, %c0_2] : memref<1x4x256xf32, #tpu.memory_space<vmem>>, vector<1x4x256xf32>
    %4 = vector.shape_cast %3 : vector<1x4x256xf32> to vector<4x256xf32>
    %c0_3 = arith.constant 0 : index
    %c0_4 = arith.constant 0 : index
    %c0_5 = arith.constant 0 : index
    %5 = vector.load %arg3[%c0_3, %c0_4, %c0_5] : memref<1x1x256xi32, #tpu.memory_space<vmem>>, vector<1x1x256xi32>
    %6 = vector.shape_cast %5 : vector<1x1x256xi32> to vector<1x256xi32>
    %cst = arith.constant dense<0xFF800000> : vector<256xf32>
    %7 = vector.multi_reduction <maximumf>, %4, %cst [0] : vector<4x256xf32> to vector<256xf32>
    %8 = vector.shape_cast %7 : vector<256xf32> to vector<1x256xf32>
    %9 = vector.broadcast %8 : vector<1x256xf32> to vector<4x256xf32>
    %10 = arith.subf %4, %9 : vector<4x256xf32>
    %11 = math.exp %10 : vector<4x256xf32>
    %cst_6 = arith.constant dense<0.000000e+00> : vector<256xf32>
    %12 = vector.multi_reduction <add>, %11, %cst_6 [0] : vector<4x256xf32> to vector<256xf32>
    %13 = vector.shape_cast %12 : vector<256xf32> to vector<1x256xf32>
    %14 = vector.broadcast %13 : vector<1x256xf32> to vector<4x256xf32>
    %15 = arith.divf %11, %14 : vector<4x256xf32>
    %16 = tpu.iota {dimensions = array<i32: 0>} : vector<4x1xi32>
    %17 = vector.broadcast %16 : vector<4x1xi32> to vector<4x256xi32>
    %18 = vector.broadcast %6 : vector<1x256xi32> to vector<4x256xi32>
    %19 = arith.cmpi eq, %17, %18 : vector<4x256xi32>
    %c1_i32 = arith.constant 1 : i32
    %20 = vector.broadcast %c1_i32 : i32 to vector<4x1xi32>
    %21 = arith.cmpi sge, %16, %20 : vector<4x1xi32>
    %22 = vector.broadcast %21 : vector<4x1xi1> to vector<4x256xi1>
    %23 = arith.andi %19, %22 : vector<4x256xi1>
    %24 = arith.extui %23 : vector<4x256xi1> to vector<4x256xi32>
    %25 = arith.sitofp %24 : vector<4x256xi32> to vector<4x256xf32>
    %c1_i32_7 = arith.constant 1 : i32
    %26 = vector.broadcast %c1_i32_7 : i32 to vector<4x1xi32>
    %27 = arith.cmpi sge, %16, %26 : vector<4x1xi32>
    %28 = arith.extui %27 : vector<4x1xi1> to vector<4x1xi32>
    %29 = arith.sitofp %28 : vector<4x1xi32> to vector<4x1xf32>
    %30 = tpu.iota {dimensions = array<i32: 1>} : vector<1x256xi32>
    %c256_i32 = arith.constant 256 : i32
    %31 = arith.muli %arg1, %c256_i32 : i32
    %32 = vector.broadcast %31 : i32 to vector<1x256xi32>
    %33 = arith.addi %30, %32 : vector<1x256xi32>
    %c256_i32_8 = arith.constant 256 : i32
    %34 = vector.broadcast %c256_i32_8 : i32 to vector<1x256xi32>
    %35 = arith.cmpi slt, %33, %34 : vector<1x256xi32>
    %36 = arith.extui %35 : vector<1x256xi1> to vector<1x256xi32>
    %37 = arith.sitofp %36 : vector<1x256xi32> to vector<1x256xf32>
    %c0_9 = arith.constant 0 : index
    %c0_10 = arith.constant 0 : index
    %38 = vector.load %arg5[%c0_9, %c0_10] : memref<4x256xf32, #tpu.memory_space<vmem>>, vector<4x256xf32>
    %39 = arith.mulf %15, %25 : vector<4x256xf32>
    %40 = arith.addf %38, %39 : vector<4x256xf32>
    %c0_11 = arith.constant 0 : index
    %c0_12 = arith.constant 0 : index
    %41 = vector.load %arg5[%c0_11, %c0_12] : memref<4x256xf32, #tpu.memory_space<vmem>>, vector<4x256xf32>
    tpu.vector_store %arg5[%c0_11, %c0_12], %40 {strides = array<i32>} : memref<4x256xf32, #tpu.memory_space<vmem>>, vector<4x256xf32>,
    %c0_13 = arith.constant 0 : index
    %c0_14 = arith.constant 0 : index
    %42 = vector.load %arg6[%c0_13, %c0_14] : memref<4x256xf32, #tpu.memory_space<vmem>>, vector<4x256xf32>
    %43 = arith.addf %42, %25 : vector<4x256xf32>
    %c0_15 = arith.constant 0 : index
    %c0_16 = arith.constant 0 : index
    %44 = vector.load %arg6[%c0_15, %c0_16] : memref<4x256xf32, #tpu.memory_space<vmem>>, vector<4x256xf32>
    tpu.vector_store %arg6[%c0_15, %c0_16], %43 {strides = array<i32>} : memref<4x256xf32, #tpu.memory_space<vmem>>, vector<4x256xf32>,
    %c0_17 = arith.constant 0 : index
    %c0_18 = arith.constant 0 : index
    %45 = vector.load %arg7[%c0_17, %c0_18] : memref<4x256xf32, #tpu.memory_space<vmem>>, vector<4x256xf32>
    %46 = vector.broadcast %29 : vector<4x1xf32> to vector<4x256xf32>
    %47 = vector.broadcast %37 : vector<1x256xf32> to vector<4x256xf32>
    %48 = arith.mulf %46, %47 : vector<4x256xf32>
    %49 = arith.mulf %15, %48 : vector<4x256xf32>
    %50 = arith.addf %45, %49 : vector<4x256xf32>
    %c0_19 = arith.constant 0 : index
    %c0_20 = arith.constant 0 : index
    %51 = vector.load %arg7[%c0_19, %c0_20] : memref<4x256xf32, #tpu.memory_space<vmem>>, vector<4x256xf32>
    tpu.vector_store %arg7[%c0_19, %c0_20], %50 {strides = array<i32>} : memref<4x256xf32, #tpu.memory_space<vmem>>, vector<4x256xf32>,
    %c0_i32_21 = arith.constant 0 : i32
    %52 = arith.cmpi eq, %arg1, %c0_i32_21 : i32
    %53 = arith.extui %52 : i1 to i32
    %c0_i32_22 = arith.constant 0 : i32
    %54 = arith.cmpi ne, %53, %c0_i32_22 : i32
    scf.if %54 {
      %c0_23 = arith.constant 0 : index
      %c0_24 = arith.constant 0 : index
      %55 = vector.load %arg5[%c0_23, %c0_24] : memref<4x256xf32, #tpu.memory_space<vmem>>, vector<4x256xf32>
      %56 = vector.shape_cast %55 : vector<4x256xf32> to vector<1x4x256xf32>
      %cst_25 = arith.constant dense<0.000000e+00> : vector<1xf32>
      %57 = vector.multi_reduction <add>, %56, %cst_25 [1, 2] : vector<1x4x256xf32> to vector<1xf32>
      %58 = vector.shape_cast %57 : vector<1xf32> to vector<1x1x1xf32>
      %59 = vector.extract %58[0, 0, 0] : f32 from vector<1x1x1xf32>
      %c0_26 = arith.constant 0 : index
      %c0_27 = arith.constant 0 : index
      %60 = vector.load %arg6[%c0_26, %c0_27] : memref<4x256xf32, #tpu.memory_space<vmem>>, vector<4x256xf32>
      %61 = vector.shape_cast %60 : vector<4x256xf32> to vector<1x4x256xf32>
      %cst_28 = arith.constant dense<0.000000e+00> : vector<1xf32>
      %62 = vector.multi_reduction <add>, %61, %cst_28 [1, 2] : vector<1x4x256xf32> to vector<1xf32>
      %63 = vector.shape_cast %62 : vector<1xf32> to vector<1x1x1xf32>
      %64 = vector.extract %63[0, 0, 0] : f32 from vector<1x1x1xf32>
      %c0_29 = arith.constant 0 : index
      %c0_30 = arith.constant 0 : index
      %65 = vector.load %arg7[%c0_29, %c0_30] : memref<4x256xf32, #tpu.memory_space<vmem>>, vector<4x256xf32>
      %66 = vector.shape_cast %65 : vector<4x256xf32> to vector<1x4x256xf32>
      %cst_31 = arith.constant dense<0.000000e+00> : vector<1xf32>
      %67 = vector.multi_reduction <add>, %66, %cst_31 [1, 2] : vector<1x4x256xf32> to vector<1xf32>
      %68 = vector.shape_cast %67 : vector<1xf32> to vector<1x1x1xf32>
      %69 = vector.extract %68[0, 0, 0] : f32 from vector<1x1x1xf32>
      %70 = vector.broadcast %59 : f32 to vector<1x128xf32>
      %71 = vector.broadcast %64 : f32 to vector<1x128xf32>
      %72 = vector.broadcast %69 : f32 to vector<1x128xf32>
      %73 = tpu.concatenate %70, %71, %72 in 0 : vector<1x128xf32>, vector<1x128xf32>, vector<1x128xf32> -> vector<3x128xf32>
      %c0_32 = arith.constant 0 : index
      %c0_33 = arith.constant 0 : index
      %c0_34 = arith.constant 0 : index
      %74 = vector.load %arg4[%c0_32, %c0_33, %c0_34] : memref<1x3x128xf32, #tpu.memory_space<vmem>>, vector<1x3x128xf32>
      %75 = vector.shape_cast %74 : vector<1x3x128xf32> to vector<3x128xf32>
      %76 = vector.shape_cast %73 : vector<3x128xf32> to vector<1x3x128xf32>
      tpu.vector_store %arg4[%c0_32, %c0_33, %c0_34], %76 {strides = array<i32>} : memref<1x3x128xf32, #tpu.memory_space<vmem>>, vector<1x3x128xf32>,
    } else {
    }
    return
  }
  func.func @transform_0(%arg0: i32, %arg1: i32) -> (i32, i32, i32) {
    %c0_i32 = arith.constant 0 : i32
    %c0_i32_0 = arith.constant 0 : i32
    return %arg0, %c0_i32, %arg1 : i32, i32, i32
  }
  func.func @transform_1(%arg0: i32, %arg1: i32) -> (i32, i32, i32) {
    %c0_i32 = arith.constant 0 : i32
    %c0_i32_0 = arith.constant 0 : i32
    return %arg0, %c0_i32, %arg1 : i32, i32, i32
  }
  func.func @transform_2(%arg0: i32, %arg1: i32) -> (i32, i32, i32) {
    %c0_i32 = arith.constant 0 : i32
    %c0_i32_0 = arith.constant 0 : i32
    %c0_i32_1 = arith.constant 0 : i32
    return %arg0, %c0_i32, %c0_i32_0 : i32, i32, i32
  }
}

</mosaic_0001>

<bundles_post_ra>
// kernel: tpu_custom_call.1
= control target key start
LH: loop header
LB: loop body
LE: loop exit
PB: predicated region body
PF: predicated region fallthrough
CT: control target
= control target key end

     0   :  { %7 = vsyncpa [#allocation6], 0  ;;  %s901_s0 = inlined_call_operand.hbm [shape: f32[2,4,256], index: 0, kind: input, shape index: {}]   ;;  %s902_s1 = inlined_call_operand.hbm [shape: s32[2,1,256], index: 1, kind: input, shape index: {}]   ;;  %s903_s2 = inlined_call_operand.vmem [shape: f32[2,3,128], index: 2, kind: output, shape index: {}]  }
   0x1   :  { %9 = vsyncpa [#allocation6 + $0x1], 0 }
   0x2   :  { %10 = vsyncpa [#allocation8], 0 }
   0x3   :  { %12 = vsyncpa [#allocation8 + $0x1], 0  ;;  %s722_s9 = smov 0   ;;  %s724_s10 = smov 0  }
   0x4   :  { %s726_s11 = smov 0   ;;  %s728_s12 = smov 0  }
   0x5   :  { %s730_s13 = smov 0   ;;  %s732_s14 = smov 0  }
   0x6 LB: > { %s494_s15 = sadd.s32 4294967295, %s702_s14   ;;  %s30_s16 = sadd.s32 1, %s698_s13  ;;  %s702_s14 = sphi %s732_s14, %s18_s14   ;;  %s698_s13 = sphi %s730_s13, %s917_s13   ;;  %s694_s12 = sphi %s728_s12, %s916_s12   ;;  %s690_s11 = sphi %s726_s11, %s915_s11   ;;  %s686_s10 = sphi %s724_s10, %s914_s10   ;;  %s682_s9 = sphi %s722_s9, %s913_s9  }
   0x7   : > { %p32_p0 = scmp.ge.s32.totalorder %s30_s16, 2  ;;  %s39_s17 = sadd.s32 1, %s690_s11 }
   0x8   : > { %p46_p1 = scmp.ne.s32.totalorder %s690_s11, %s686_s10  ;;  %p47_p2 = scmp.eq.s32.totalorder %s702_s14, 0 }
   0x9   : > { %s919_s16 = smov (%p32_p0, %s30_s16), 0  ;;  %p52_p4 = scmp.ne.s32.totalorder %s686_s10, %s682_s9 }
   0xa   : > { %p758_p3 = por %p47_p2, %p46_p1  ;;  %s34_s19 = ssub.s32 %s698_s13, %s919_s16 }
   0xb   : > { %p53_p5 = scmp.eq.s32.totalorder %s494_s15, 0  ;;  %p37_p6 = scmp.eq.s32.totalorder %s34_s19, 0 }
   0xc   : > { %p533_p8 = scmp.lt.s32.totalorder %s702_s14, 2  ;;  %s774_s22 = sand.u32 1, %s690_s11  }
   0xd   : > { %p765_p7 = por %p53_p5, %p52_p4  ;;  %s513_s23 = sshll.u32 %s698_s13, 7 }
   0xe   : > { %s771_s21 = scalar_select %p37_p6, %s690_s11, %s39_s17  }
   0xf   : > { %s906_s20 = scalar_select %p765_p7, 1, 0 }
  0x10   : > { %s498_s24 = sshll.u32 %s774_s22, 3  ;;  %s781_s27 = scalar_lea.hbm %s901_s0, %s513_s23 }
  0x11   : > { %s134_s28 = scalar_lea.vmem [#allocation5], %s498_s24  ;;  %p785_p9 = pnand %p533_p8, %p758_p3 }
  0x12   : > { %s144_s29 = sshll.u32 %s134_s28, 4  ;;  %s131_s3 = scalar_lea.sflag [#allocation6], %s774_s22  ;;  %s789_s29 = int_to_ptr.vmem [resolvable:$true] %s144_s29 }
  0x13   : > { %s588_s4 = scalar_lea.hbm %s781_s27, 128  ;;  %p590_p13 = pneg %p785_p9 }
  0x14   : > { %p589_p12 = scmp.ne.s32.totalorder %s781_s27, %s588_s4  ;;  %s593_s7 = scalar_lea.hbm %s901_s0, 256 }
  0x15   : > { %p594_p2 = scmp.lt.u32.totalorder %s781_s27, %s901_s0  ;;  %p595_p3 = scmp.lt.u32.totalorder %s593_s7, %s588_s4 }
  0x16   : > { %p591_p0 = pnand %p590_p13, %p589_p12  ;;  %p597_p5 = scmp.lt.u32.totalorder %s588_s4, %s781_s27 }
  0x17   : > { %p596_p4 = por %p595_p3, %p594_p2 }
  0x18   : > { %p592_p1 = pneg %p591_p0 }
  0x19   : > { %p598_p6 = por %p597_p5, %p596_p4 }
  0x1b   : > { %p599_p8 = pnand %p598_p6, %p592_p1 }
  0x1d   : > { %602 = shalt.err (!%p599_p8)
}
  0x1e   : > { %s603_s15 = scalar_lea.vmem %s789_s29, 128  ;;  %s704_s17 = smov [#allocation5]  }
  0x1f   : > { %p604_p12 = scmp.ne.s32.totalorder %s789_s29, %s603_s15  ;;  %s608_s18 = sshll.u32 %s704_s17, 4  ;;  %s609_s18 = int_to_ptr.vmem [resolvable:$false] %s608_s18 }
  0x20   : > { %s610_s19 = scalar_lea.vmem %s609_s18, 256  ;;  %p611_p11 = scmp.lt.s32.totalorder %s789_s29, %s609_s18 }
  0x21   : > { %p606_p0 = pnand %p604_p12, %p590_p13  ;;  %p612_p2 = scmp.lt.s32.totalorder %s610_s19, %s603_s15 }
  0x23   : > { %p607_p10 = pneg %p606_p0  ;;  %p613_p3 = por %p612_p2, %p611_p11 }
  0x25   : > { %p614_p4 = pnand %p613_p3, %p607_p10 }
  0x27   : > { %617 = shalt.err (!%p614_p4)
}
  0x28   : > { %529 = dma.hbm_to_vmem [thread:$0]  (!%p785_p9), %s781_s27, 128, %s789_s29, %s131_s3  }
  0x29   : > { %p908_p1 = scmp.lt.s32.totalorder %s702_s14, 3  ;;  %p909_p5 = scmp.ge.s32.totalorder %s702_s14, 1 }
  0x2a   : > { %s501_s24 = sshll.u32 %s774_s22, 1  ;;  %s514_s25 = sshll.u32 %s698_s13, 5 }
  0x2b   : > { %p823_p6 = pnand %p909_p5, %p908_p1  ;;  %s832_s4 = scalar_lea.hbm %s902_s1, %s514_s25 }
  0x2c   : > { %s155_s5 = scalar_lea.vmem [#allocation7], %s501_s24  ;;  %s152_s27 = scalar_lea.sflag [#allocation8], %s774_s22 }
  0x2d   : > { %s910_s23 = scalar_select %p823_p6, 1, 0 }
  0x2e   : > { %s165_s6 = sshll.u32 %s155_s5, 4  ;;  %s618_s29 = scalar_lea.hbm %s832_s4, 32  ;;  %s166_s6 = int_to_ptr.vmem [resolvable:$true] %s165_s6 }
  0x2f   : > { %p619_p10 = scmp.ne.s32.totalorder %s832_s4, %s618_s29  ;;  %s623_s8 = scalar_lea.hbm %s902_s1, 64 }
  0x30   : > { %p624_p12 = scmp.lt.u32.totalorder %s832_s4, %s902_s1  ;;  %p625_p0 = scmp.lt.u32.totalorder %s623_s8, %s618_s29 }
  0x31   : > { %p621_p11 = pnand %p619_p10, %p590_p13  ;;  %p627_p3 = scmp.lt.u32.totalorder %s618_s29, %s832_s4 }
  0x32   : > { %p626_p2 = por %p625_p0, %p624_p12 }
  0x33   : > { %p622_p8 = pneg %p621_p11 }
  0x34   : > { %p628_p4 = por %p627_p3, %p626_p2 }
  0x36   : > { %p629_p1 = pnand %p628_p4, %p622_p8 }
  0x38   : > { %632 = shalt.err (!%p629_p1)
}
  0x39   : > { %s633_s22 = scalar_lea.vmem %s166_s6, 32  ;;  %s705_s17 = smov [#allocation7]  }
  0x3a   : > { %p634_p5 = scmp.ne.s32.totalorder %s166_s6, %s633_s22  ;;  %s638_s18 = sshll.u32 %s705_s17, 4  ;;  %s639_s18 = int_to_ptr.vmem [resolvable:$false] %s638_s18 }
  0x3b   : > { %s640_s19 = scalar_lea.vmem %s639_s18, 64  ;;  %p641_p7 = scmp.lt.s32.totalorder %s166_s6, %s639_s18 }
  0x3c   : > { %p636_p10 = pnand %p634_p5, %p590_p13  ;;  %p642_p6 = scmp.lt.s32.totalorder %s640_s19, %s633_s22 }
  0x3e   : > { %p637_p11 = pneg %p636_p10  ;;  %p643_p0 = por %p642_p6, %p641_p7 }
  0x40   : > { %p644_p12 = pnand %p643_p0, %p637_p11 }
  0x42   : > { %647 = shalt.err (!%p644_p12)
}
  0x43   : > { %532 = dma.hbm_to_vmem [thread:$0]  (!%p785_p9), %s832_s4, 32, %s166_s6, %s152_s27  }
  0x44   : > { %p911_p8 = scmp.ne.s32.totalorder %s910_s23, 0 }
  0x45   : > { %s176_s24 = sand.u32 (!%p911_p8), 1, %s686_s10   ;;  %p912_p13 = scmp.ne.s32.totalorder (!%p911_p8), %s906_s20, 0 }
  0x46   : > { %174 = sbr.rel (%p911_p8) target bundleno = 363 (0x16b), region = 28  ;;  %s505_s25 = sshll.u32 (!%p911_p8), %s176_s24, 3 }
  0x47   : > { %s177_s26 = scalar_lea.sflag (!%p911_p8), [#allocation6], %s176_s24  ;;  %s180_s28 = scalar_lea.vmem (!%p911_p8), [#allocation5], %s505_s25 }
  0x4d   : > { %673 = dma.done.wait (%p912_p13), %s177_s26, 128  }
  0x4e   : > { %675 = vsyncadd (%p912_p13), %s177_s26, 4294967168  ;;  %s506_s5 = sshll.u32 %s176_s24, 1  ;;  %s186_s29 = scalar_lea.sflag [#allocation8], %s176_s24 }
  0x4f   : > { %s861_s30 = scalar_lea.vmem [#allocation7], %s506_s5 }
  0x50   : > { %677 = dma.done.wait (%p912_p13), %s186_s29, 32  }
  0x51   : > { %679 = vsyncadd (%p912_p13), %s186_s29, 4294967264  ;;  %vm232_vm0 = vcmask 1043456   ;;  %v227_v0 = vld [vmem:[%s180_s28] sm:$0xff]  ;;  %v277_v22 = vlaneseq  ;;  %v228_v35 = vld [vmem:[%s861_s30] sm:$0x3]  ;;  %v706_v43 = vmov 0.0  }
  0x52   : > { %v230_v1 = vcombine.high %v227_v0, %v227_v0  ;;  %v233_v2 = vsel %vm232_vm0, %v227_v0, -inf  ;;  %p216_p7 = scmp.lt.s32.totalorder %s694_s12, 1  ;;  %vm387_vm6 = vcmask 1040384   ;;  %vm389_vm7 = vcmask 1041408  }
  0x53   : > { %v234_v3 = vrot.slane %v233_v2, 4  ;;  %v278_v27 = vshrl.u32 %v277_v22, 7 }
  0x54   : > { %v240_v4 = vsel %vm232_vm0, %v230_v1, -inf  ;;  %s921_s12 = smov (!%p216_p7, %s694_s12), 1 }
  0x55   : > { %v235_v5 = vmax.f32 %v233_v2, %v234_v3  ;;  %v241_v6 = vrot.slane %v240_v4, 4  ;;  %v281_v32 = vsub.s32 0, %v278_v27  ;;  %v285_v36 = vsub.s32 1, %v278_v27  ;;  %s507_s23 = sshll.u32 %s921_s12, 2 }
  0x56   : > { %vm289_vm1 = vcmp.ge.s32.totalorder %v278_v27, 1  ;;  %s219_s3 = scalar_lea.vmem %s903_s2, %s507_s23 }
  0x57   : > { %v236_v7 = vrot.slane %v235_v5, 2  ;;  %v242_v8 = vmax.f32 %v240_v4, %v241_v6  ;;  %v282_v39 = vrot.slane %v228_v35, %v281_v32  ;;  %v286_v41 = vrot.slane %v228_v35, %v285_v36 }
  0x58   : > { %v510_v44 = vsel %vm289_vm1, 1.0, %v706_v43 }
  0x59   : > { %v237_v9 = vmax.f32 %v235_v5, %v236_v7  ;;  %v243_v10 = vrot.slane %v242_v8, 2  ;;  %vm287_vm2 = vcmp.eq.s32.totalorder %v278_v27, %v282_v39  ;;  %vm288_vm3 = vcmp.eq.s32.totalorder %v278_v27, %v286_v41 }
  0x5a   : > { %vm292_vm4 = vmand %vm287_vm2, %vm289_vm1  ;;  %v328_v47 = vcombine.low %v510_v44, %v510_v44 }
  0x5b   : > { %v238_v11 = vrot.slane %v237_v9, 1  ;;  %v244_v12 = vmax.f32 %v242_v8, %v243_v10  ;;  %vm293_vm5 = vmand %vm288_vm3, %vm289_vm1  ;;  %v508_v45 = vsel %vm292_vm4, 1.0, %v706_v43 }
  0x5c   : > { %v509_v46 = vsel %vm293_vm5, 1.0, %v706_v43 }
  0x5d   : > { %v239_v13 = vmax.f32 %v237_v9, %v238_v11  ;;  %v245_v14 = vrot.slane %v244_v12, 1  ;;  %v315_v48 = vcombine.low %v508_v45, %v509_v46  ;;  %v515_v53 = vcombine.low %v509_v46, %v509_v46 }
  0x5f   : > { %v246_v15 = vmax.f32 %v244_v12, %v245_v14  ;;  %v356_v60 = vsel %vm232_vm0, %v315_v48, 0.0  ;;  %v357_v61 = vsel %vm232_vm0, %v515_v53, 0.0 }
  0x61   : > { %v249_v16 = vcombine.low %v239_v13, %v246_v15 }
  0x63   : > { %v251_v17 = vsub.f32 %v227_v0, %v249_v16  ;;  %v358_v0 = vadd.f32 %v357_v61, %v356_v60 }
  0x65   : > { %v252_v18 = vmul.f32 1.442695, %v251_v17 }
  0x67   : > { %584 = vpow2.f32 %v252_v18 }
  0x71   : > { %v585_v19 = vpop.eup %584 }
  0x72   : > { %v255_v20 = vcombine.high %v585_v19, %v585_v19  ;;  %v257_v21 = vsel %vm232_vm0, %v585_v19, 0.0 }
  0x73   : > { %v258_v23 = vrot.slane %v257_v21, 4 }
  0x74   : > { %v264_v24 = vsel %vm232_vm0, %v255_v20, 0.0 }
  0x75   : > { %v259_v25 = vadd.f32 %v258_v23, %v257_v21  ;;  %v265_v26 = vrot.slane %v264_v24, 4 }
  0x77   : > { %v260_v28 = vrot.slane %v259_v25, 2  ;;  %v266_v29 = vadd.f32 %v265_v26, %v264_v24 }
  0x79   : > { %v261_v30 = vadd.f32 %v260_v28, %v259_v25  ;;  %v267_v31 = vrot.slane %v266_v29, 2 }
  0x7b   : > { %v262_v33 = vrot.slane %v261_v30, 1  ;;  %v268_v34 = vadd.f32 %v267_v31, %v266_v29 }
  0x7d   : > { %v263_v37 = vadd.f32 %v262_v33, %v261_v30  ;;  %v269_v38 = vrot.slane %v268_v34, 1 }
  0x7f   : > { %v270_v40 = vadd.f32 %v269_v38, %v268_v34 }
  0x81   : > { %v273_v42 = vcombine.low %v263_v37, %v270_v40 }
  0x83   : > { %586 = vrcp.f32 %v273_v42 }
  0x8d   : > { %v587_v49 = vpop.eup %586 }
  0x8e   : > { %v276_v50 = vmul.f32 %v587_v49, %v585_v19 }
  0x90   : > { %v330_v51 = vmul.f32 %v328_v47, %v276_v50  ;;  %v317_v52 = vmul.f32 %v315_v48, %v276_v50 }
  0x92   : > { %v370_v54 = vcombine.high %v330_v51, %v330_v51  ;;  %v372_v55 = vsel %vm232_vm0, %v330_v51, 0.0  ;;  %v338_v56 = vcombine.high %v317_v52, %v317_v52  ;;  %v340_v57 = vsel %vm232_vm0, %v317_v52, 0.0 }
  0x94   : > { %v373_v58 = vsel %vm232_vm0, %v370_v54, 0.0  ;;  %v341_v59 = vsel %vm232_vm0, %v338_v56, 0.0 }
  0x95   : > { %v374_v62 = vadd.f32 %v373_v58, %v372_v55  ;;  %v342_v63 = vadd.f32 %v341_v59, %v340_v57 }
  0x97   : > { %375 = vadd.xlane.f32.xlu1 %v374_v62  ;;  %343 = vadd.xlane.f32.xlu0 %v342_v63 }
  0x9b   : > { %359 = vadd.xlane.f32.xlu0 %v358_v0 }
 0x124   : > { %v376_v1 = vpop.xlane.xlu1 %375  ;;  %v344_v2 = vpop.xlane.xlu0 %343 }
 0x125   : > { %v377_v3 = vrot.slane %v376_v1, 4  ;;  %v345_v4 = vrot.slane %v344_v2, 4 }
 0x127   : > { %v378_v5 = vadd.f32 %v377_v3, %v376_v1  ;;  %v346_v6 = vadd.f32 %v345_v4, %v344_v2 }
 0x128   : > { %v360_v7 = vpop.xlane.xlu0 %359 }
 0x129   : > { %v379_v8 = vrot.slane %v378_v5, 2  ;;  %v347_v9 = vrot.slane %v346_v6, 2  ;;  %v361_v10 = vrot.slane %v360_v7, 4 }
 0x12b   : > { %v362_v11 = vadd.f32 %v361_v10, %v360_v7  ;;  %v348_v12 = vadd.f32 %v347_v9, %v346_v6  ;;  %v380_v13 = vadd.f32 %v379_v8, %v378_v5 }
 0x12d   : > { %v363_v14 = vrot.slane %v362_v11, 2  ;;  %v349_v15 = vrot.slane %v348_v12, 1  ;;  %v381_v18 = vrot.slane %v380_v13, 1 }
 0x12f   : > { %v364_v16 = vadd.f32 %v363_v14, %v362_v11  ;;  %v350_v17 = vadd.f32 %v349_v15, %v348_v12  ;;  %v382_v21 = vadd.f32 %v381_v18, %v380_v13 }
 0x131   : > { %516 = vpush %v350_v17  ;;  %v365_v19 = vrot.slane %v364_v16, 1 }
 0x133   : > { %v366_v20 = vadd.f32 %v365_v19, %v364_v16 }
 0x135   : > { %518 = vpush %v366_v20 }
 0x136   : > { %520 = vpush %v382_v21 }
 0x162   : > { %s517_s20 = spop %516 }
 0x163   : > { %v384_v22 = vstv %s517_s20 }
 0x166   : > { %s519_s4 = spop %518 }
 0x167   : > { %v385_v23 = vstv %s519_s4  ;;  %s521_s7 = spop %520 }
 0x168   : > { %v388_v24 = vsel %vm387_vm6, %v384_v22, %v385_v23  ;;  %v386_v25 = vstv %s521_s7 }
 0x169   : > { %v390_v26 = vsel %vm389_vm7, %v388_v24, %v386_v25 }
 0x16a   : > { %391 = vst [vmem:[%s219_s3] sm:$0x7] %v390_v26 }
 0x16b PF: > { %s18_s14 = sadd.s32 1, %s702_s14   ;;  %s913_s9 = smov %s686_s10 }
 0x16c   : > { %p15_p9 = scmp.ge.s32.totalorder %s18_s14, 4   ;;  %s914_s10 = smov %s690_s11 }
 0x16d   : > { %s915_s11 = smov %s771_s21  ;;  %s916_s12 = smov %s698_s13 }
 0x16e   : > { %s917_s13 = smov %s919_s16  ;;  %17 = sbr.rel (!%p15_p9) target bundleno = 6 (0x6), region = 89 }
 0x175   :  { %411 = vsyncpa [#allocation6], 1 }
 0x176   :  { %413 = vsyncpa [#allocation6 + $0x1], 1 }
 0x177   :  { %414 = vsyncpa [#allocation8], 1 }
 0x178   :  { %416 = vsyncpa [#allocation8 + $0x1], 1 }

</bundles_post_ra>
